<compile_context>
chip_gen: v7x
topology: tpu7x:2x2x1
jax: 0.10.0
libtpu: 0.0.40
codegen_flags: <defaults>
</compile_context>

<pallas_src>
import functools

import jax
import jax.numpy as jnp
from jax.experimental import pallas as pl
from jax.experimental.pallas import tpu as pltpu


def _round_up(x, m):
    return (x + m - 1) // m * m


# ----------------------------- Pallas kernels -----------------------------

def _stem_kernel(x_ref, w_ref, b_ref, o_ref):
    """Fused (pre-folded) backbone projection + input_proj: single per-pixel matmul."""
    y = (jnp.dot(x_ref[...].astype(jnp.bfloat16), w_ref[...],
                 preferred_element_type=jnp.float32) + b_ref[...])
    o_ref[...] = y.astype(o_ref.dtype)


def pallas_stem(rows, stem_p, block_rows=512):
    """rows: (N, 3) NHWC pixel rows -> (N, hidden_dim) projected features."""
    n, cin = rows.shape
    cout = stem_p["w"].shape[1]
    br = min(block_rows, _round_up(n, 8))
    n_pad = _round_up(n, br)
    if n_pad != n:
        rows = jnp.pad(rows, ((0, n_pad - n), (0, 0)))
    out = pl.pallas_call(
        _stem_kernel,
        out_shape=jax.ShapeDtypeStruct((n_pad, cout), jnp.float32),
        grid=(n_pad // br,),
        in_specs=[
            pl.BlockSpec((br, cin), lambda i: (i, 0)),
            pl.BlockSpec((cin, cout), lambda i: (0, 0)),
            pl.BlockSpec((1, cout), lambda i: (0, 0)),
        ],
        out_specs=pl.BlockSpec((br, cout), lambda i: (i, 0)),
        compiler_params=pltpu.CompilerParams(dimension_semantics=("parallel",)),
    )(rows, stem_p["w"], stem_p["b"])
    return out[:n]


def _decoder_layer_kernel(memk_ref, memv_ref, qemb_ref,
                          wq_ref, bq_ref, wk_ref, bk_ref, wv_ref, bv_ref,
                          wo_ref, bo_ref, w1_ref, b1_ref, w2_ref, b2_ref,
                          hs_ref, tgt_ref, *, scale):
    """One (batch b, layer l) step; `tgt` carried across layers in VMEM scratch."""
    bf = jnp.bfloat16

    @pl.when(pl.program_id(1) == 0)
    def _():
        tgt_ref[...] = jnp.zeros_like(tgt_ref)

    tgt = tgt_ref[...]                       # (Qn, D) f32
    k_in = memk_ref[0]                       # (S, D)  bf16  (mem + pos, precomputed once)
    v_in = memv_ref[0]                       # (S, D)  bf16

    q_in = (tgt + qemb_ref[...]).astype(bf)  # (Qn, D)
    q = jnp.dot(q_in, wq_ref[0], preferred_element_type=jnp.float32) + bq_ref[0]
    k = jnp.dot(k_in, wk_ref[0], preferred_element_type=jnp.float32) + bk_ref[0]
    v = jnp.dot(v_in, wv_ref[0], preferred_element_type=jnp.float32) + bv_ref[0]

    # single-head cross-attention (queries attend to memory)
    s = jax.lax.dot_general(q.astype(bf), k.astype(bf),
                            dimension_numbers=(((1,), (1,)), ((), ())),
                            preferred_element_type=jnp.float32) * scale     # (Qn, S)
    m = jnp.max(s, axis=-1, keepdims=True)
    p = jnp.exp(s - m)
    p = p * pl.reciprocal(jnp.sum(p, axis=-1, keepdims=True), approx=True)
    attn = jnp.dot(p.astype(bf), v.astype(bf), preferred_element_type=jnp.float32)

    attn_o = (jnp.dot(attn.astype(bf), wo_ref[0],
                      preferred_element_type=jnp.float32) + bo_ref[0])
    tgt2 = tgt + attn_o

    # FFN + residual
    h = jnp.maximum(jnp.dot(tgt2.astype(bf), w1_ref[0],
                            preferred_element_type=jnp.float32) + b1_ref[0], 0.0)
    h = jnp.dot(h.astype(bf), w2_ref[0], preferred_element_type=jnp.float32) + b2_ref[0]
    tgt2 = tgt2 + h

    tgt_ref[...] = tgt2
    hs_ref[...] = tgt2.astype(hs_ref.dtype).reshape(hs_ref.shape)


def pallas_decoder(mem_k, mem_v, qemb, dec):
    """mem_k/mem_v: (B,S,D) bf16 (mem+pos / mem), qemb: (Qn,D) f32 -> hs: (L,B,Qn,D) f32."""
    B, S, D = mem_k.shape
    Qn = qemb.shape[0]
    L = dec["wq"].shape[0]

    def mem_spec(shape):
        return pl.BlockSpec((1,) + tuple(shape[1:]), lambda b, l: (b, 0, 0))

    def w_spec(shape):
        return pl.BlockSpec((1,) + tuple(shape[1:]),
                            lambda b, l: (l,) + (0,) * (len(shape) - 1))

    # NOTE: mem/qemb blocks keep a constant index across the inner layer axis, so they are
    # DMA'd only once per batch; a single-buffer (pl.Buffered(1)) hint would reclaim one
    # revolving copy on v7x's smaller VMEM but is left at the default here.
    kern = functools.partial(_decoder_layer_kernel, scale=1.0 / (D ** 0.5))
    return pl.pallas_call(
        kern,
        out_shape=jax.ShapeDtypeStruct((L, B, Qn, D), jnp.float32),
        grid=(B, L),
        in_specs=[
            mem_spec(mem_k.shape), mem_spec(mem_v.shape),
            pl.BlockSpec((Qn, D), lambda b, l: (0, 0)),
            w_spec(dec["wq"].shape), w_spec(dec["bq"].shape),
            w_spec(dec["wk"].shape), w_spec(dec["bk"].shape),
            w_spec(dec["wv"].shape), w_spec(dec["bv"].shape),
            w_spec(dec["wo"].shape), w_spec(dec["bo"].shape),
            w_spec(dec["w1"].shape), w_spec(dec["b1"].shape),
            w_spec(dec["w2"].shape), w_spec(dec["b2"].shape),
        ],
        out_specs=pl.BlockSpec((1, 1, Qn, D), lambda b, l: (l, b, 0, 0)),
        scratch_shapes=[pltpu.VMEM((Qn, D), jnp.float32)],
        compiler_params=pltpu.CompilerParams(
            dimension_semantics=("parallel", "arbitrary")),
    )(mem_k, mem_v, qemb,
      dec["wq"], dec["bq"], dec["wk"], dec["bk"], dec["wv"], dec["bv"],
      dec["wo"], dec["bo"], dec["w1"], dec["b1"], dec["w2"], dec["b2"])


def _heads_kernel(x_ref, w1_ref, b1_ref, w2_ref, b2_ref, w3_ref, wc_ref, b3_ref, o_ref):
    """All six prediction heads fused; per-head matmuls accumulated into one lane-dense slab."""
    bf = jnp.bfloat16
    x = x_ref[...]                                                   # (br, D) bf16
    y = jnp.dot(x, wc_ref[...], preferred_element_type=jnp.float32) + b3_ref[...]
    for i in range(w1_ref.shape[0]):                                 # static unroll over heads
        h = jnp.maximum(jnp.dot(x, w1_ref[i],
                                preferred_element_type=jnp.float32) + b1_ref[i], 0.0)
        h = jnp.maximum(jnp.dot(h.astype(bf), w2_ref[i],
                                preferred_element_type=jnp.float32) + b2_ref[i], 0.0)
        y = y + jnp.dot(h.astype(bf), w3_ref[i], preferred_element_type=jnp.float32)
    o_ref[...] = y.astype(o_ref.dtype)


def pallas_heads(x, hp, block_rows=512):
    """x: (N, D) bf16 decoder features -> (N, P) fused head outputs (P lane-dense)."""
    n, d = x.shape
    nh, _, _ = hp["w1stk"].shape
    p_width = hp["w3stk"].shape[2]
    br = min(block_rows, _round_up(n, 16))
    n_pad = _round_up(n, br)
    if n_pad != n:
        x = jnp.pad(x, ((0, n_pad - n), (0, 0)))
    out = pl.pallas_call(
        _heads_kernel,
        out_shape=jax.ShapeDtypeStruct((n_pad, p_width), jnp.float32),
        grid=(n_pad // br,),
        in_specs=[
            pl.BlockSpec((br, d), lambda i: (i, 0)),
            pl.BlockSpec((nh, d, d), lambda i: (0, 0, 0)),
            pl.BlockSpec((nh, 1, d), lambda i: (0, 0, 0)),
            pl.BlockSpec((nh, d, d), lambda i: (0, 0, 0)),
            pl.BlockSpec((nh, 1, d), lambda i: (0, 0, 0)),
            pl.BlockSpec((nh, d, p_width), lambda i: (0, 0, 0)),
            pl.BlockSpec((d, p_width), lambda i: (0, 0)),
            pl.BlockSpec((1, p_width), lambda i: (0, 0)),
        ],
        out_specs=pl.BlockSpec((br, p_width), lambda i: (i, 0)),
        compiler_params=pltpu.CompilerParams(dimension_semantics=("parallel",)),
    )(x, hp["w1stk"], hp["b1stk"], hp["w2stk"], hp["b2stk"],
      hp["w3stk"], hp["wcpad"], hp["b3pad"])
    return out[:n]


# ----------------------------- parameter init & fusion -----------------------------

def _init_linear(key, d_in, d_out, dtype=jnp.float32):
    kw, kb = jax.random.split(key)
    bound = 1.0 / (d_in ** 0.5)
    w = jax.random.uniform(kw, (d_in, d_out), dtype, -bound, bound)
    b = jax.random.uniform(kb, (d_out,), dtype, -bound, bound)
    return w, b


def init_detr_params(key, num_channels, hidden_dim, num_classes, num_queries,
                     num_dec_layers):
    keys = jax.random.split(key, 10 + num_dec_layers)
    p = {}
    # DETR-owned parameters (same shapes as the PyTorch module __init__).
    p["input_proj"] = _init_linear(keys[0], num_channels, hidden_dim)       # 1x1 conv
    p["class_embed"] = _init_linear(keys[1], hidden_dim, num_classes + 1)

    def mlp(k, out_dim):
        k1, k2, k3 = jax.random.split(k, 3)
        return (_init_linear(k1, hidden_dim, hidden_dim),
                _init_linear(k2, hidden_dim, hidden_dim),
                _init_linear(k3, hidden_dim, out_dim))

    p["bbox_embed"] = mlp(keys[2], 4)
    p["offset_embed"] = mlp(keys[3], 2)
    p["angle_embed"] = mlp(keys[4], 60)
    p["size_embed"] = mlp(keys[5], 3)
    p["depth_embed"] = mlp(keys[6], 1)
    p["query_embed"] = jax.random.normal(keys[7], (num_queries, hidden_dim), jnp.float32)

    # Stub backbone / transformer parameters (external modules in the original).
    p["backbone_proj"] = _init_linear(keys[8], 3, num_channels)
    layers = []
    for l in range(num_dec_layers):
        kq, kk, kv, ko, kf1, kf2 = jax.random.split(keys[10 + l], 6)
        layers.append(dict(
            wq=_init_linear(kq, hidden_dim, hidden_dim),
            wk=_init_linear(kk, hidden_dim, hidden_dim),
            wv=_init_linear(kv, hidden_dim, hidden_dim),
            wo=_init_linear(ko, hidden_dim, hidden_dim),
            ffn1=_init_linear(kf1, hidden_dim, 2 * hidden_dim),
            ffn2=_init_linear(kf2, 2 * hidden_dim, hidden_dim),
        ))
    p["decoder_layers"] = layers
    return p


def fuse_detr_params(p, hidden_dim, num_classes):
    """Build the fused / stacked / bf16 parameter slabs the kernels consume."""
    bf = jnp.bfloat16
    D = hidden_dim
    fp = {}

    # stem: algebraically fold backbone projection + input_proj (no nonlinearity between).
    # Fold in f32 first, then cast to bf16 (avoids compounding quantization error).
    wbb, bbb = p["backbone_proj"]
    wp, bp = p["input_proj"]
    w_comb = wbb @ wp                                   # (3, D) f32
    b_comb = bbb @ wp + bp                              # (D,)  f32
    fp["stem"] = dict(w=w_comb.astype(bf), b=b_comb[None])

    fp["query_embed"] = p["query_embed"]

    # decoder: stack per-layer weights along a leading layer axis
    dec = p["decoder_layers"]
    name_map = dict(wq="wq", wk="wk", wv="wv", wo="wo", w1="ffn1", w2="ffn2")
    d = {}
    for short, long in name_map.items():
        d[short] = jnp.stack([lyr[long][0] for lyr in dec]).astype(bf)       # (L, din, dout)
        d["b" + short[1:]] = jnp.stack([lyr[long][1][None] for lyr in dec])  # (L, 1, dout) f32
    fp["dec"] = d

    # prediction heads: class linear + five 3-layer MLPs fused (per-head stacked weights)
    head_names = ["bbox", "angle", "offset", "size", "depth"]
    head_params = [p[n + "_embed"] for n in head_names]
    out_dims = [hp[2][0].shape[1] for hp in head_params]
    C1 = num_classes + 1
    total = C1 + sum(out_dims)
    P = max(128, _round_up(total, 128))

    cols = {}
    off = 0
    cols["class"] = (off, off + C1); off += C1
    for n, od in zip(head_names, out_dims):
        cols[n] = (off, off + od); off += od

    w1stk = jnp.stack([hp[0][0] for hp in head_params])            # (5, D, D)
    b1stk = jnp.stack([hp[0][1][None] for hp in head_params])      # (5, 1, D)
    w2stk = jnp.stack([hp[1][0] for hp in head_params])            # (5, D, D)
    b2stk = jnp.stack([hp[1][1][None] for hp in head_params])      # (5, 1, D)

    w3stk = jnp.zeros((len(head_names), D, P), jnp.float32)
    b3pad = jnp.zeros((1, P), jnp.float32)
    for i, (n, hp) in enumerate(zip(head_names, head_params)):
        lo, hi = cols[n]
        w3stk = w3stk.at[i, :, lo:hi].set(hp[2][0])
        b3pad = b3pad.at[0, lo:hi].set(hp[2][1])
    wc, bc = p["class_embed"]
    lo, hi = cols["class"]
    wcpad = jnp.zeros((D, P), jnp.float32).at[:, lo:hi].set(wc)
    b3pad = b3pad.at[0, lo:hi].set(bc)

    fp["heads"] = dict(w1stk=w1stk.astype(bf), b1stk=b1stk,
                       w2stk=w2stk.astype(bf), b2stk=b2stk,
                       w3stk=w3stk.astype(bf), wcpad=wcpad.astype(bf), b3pad=b3pad)
    fp["head_cols"] = cols
    return fp


# ----------------------------- stubs (external modules) -----------------------------

def sine_pos_embedding(H, W, D):
    # TODO(synk): DETR's PositionEmbeddingSine lives in the external backbone module;
    # simplified deterministic sinusoidal encoding used here.
    half = D // 2
    i = jnp.arange(half, dtype=jnp.float32)
    freq = 1.0 / (10000.0 ** (i / half))
    ys = jnp.arange(H, dtype=jnp.float32)
    xs = jnp.arange(W, dtype=jnp.float32)
    py = jnp.sin(ys[:, None] * freq[None, :])                         # (H, half)
    px = jnp.cos(xs[:, None] * freq[None, :])                         # (W, half)
    pos = jnp.concatenate([
        jnp.broadcast_to(py[:, None, :], (H, W, half)),
        jnp.broadcast_to(px[None, :, :], (H, W, half)),
    ], axis=-1)                                                       # (H, W, D)
    return pos.reshape(H * W, D)


# ----------------------------- DETR forward -----------------------------

def detr_forward(fp, images, mask, hidden_dim, aux_loss=False):
    B, Cimg, H, W = images.shape
    # Backbone stub: 2x average pool, then a single NCHW -> NHWC boundary transpose.
    x = images.reshape(B, Cimg, H // 2, 2, W // 2, 2).mean(axis=(3, 5))   # (B, 3, H2, W2)
    H2, W2 = H // 2, W // 2
    rows = jnp.transpose(x, (0, 2, 3, 1)).reshape(B * H2 * W2, Cimg)      # NHWC rows
    mask_ds = mask[:, ::2, ::2]
    # TODO(synk): key_padding_mask (mask_ds) is not applied inside the simplified attention.

    # stem: fused (pre-folded) backbone projection + input_proj (1x1 conv)
    src = pallas_stem(rows, fp["stem"])                                   # (B*S, D) f32
    S = H2 * W2
    mem = src.reshape(B, S, hidden_dim)
    pos = sine_pos_embedding(H2, W2, hidden_dim)                          # (S, D)

    # precompute mem+pos ONCE; keys/values go to the decoder as bf16 (matmul inputs only)
    mem_k = (mem + pos[None]).astype(jnp.bfloat16)
    mem_v = mem.astype(jnp.bfloat16)

    # pad num_queries to a multiple of 8 so decoder reshapes/stores stay tile-aligned
    qemb = fp["query_embed"]
    Qn = qemb.shape[0]
    Qn_pad = _round_up(Qn, 8)
    if Qn_pad != Qn:
        qemb = jnp.pad(qemb, ((0, Qn_pad - Qn), (0, 0)))

    # decoder -> hs: [L, B, Qn_pad, D]
    hs = pallas_decoder(mem_k, mem_v, qemb, fp["dec"])
    hs_objs = hs[:, :, :Qn]                                               # (L, B, Qn, D)
    L = hs_objs.shape[0]
    hs_flat = hs_objs.reshape(L * B * Qn, hidden_dim).astype(jnp.bfloat16)

    # fused prediction heads: one row-tiled kernel, one lane-dense output slab
    slab = pallas_heads(hs_flat, fp["heads"])                             # (L*B*Qn, P) f32

    cols = fp["head_cols"]

    def take(name):
        lo, hi = cols[name]
        return slab[:, lo:hi].reshape(L, B, Qn, hi - lo)

    outputs_class = take("class")
    outputs_coord = jax.nn.sigmoid(take("bbox"))   # exact sigmoid on the 4 bbox cols only
    outputs_angle = take("angle")
    outputs_offset = take("offset")
    outputs_size = take("size")
    outputs_depth = take("depth")

    out = {
        "pred_logits": outputs_class[-1],
        "pred_boxes": outputs_coord[-1],
        "pred_angle": outputs_angle[-1],
        "pred_offset": outputs_offset[-1],
        "pred_size": outputs_size[-1],
        "pred_depth": outputs_depth[-1],
        "pred_obj_features": hs_objs[-1],
    }
    if aux_loss:
        out["aux_outputs"] = [
            {"pred_logits": a, "pred_boxes": b, "pred_angle": c,
             "pred_offset": d, "pred_size": e, "pred_depth": f}
            for a, b, c, d, e, f in zip(outputs_class[:-1], outputs_coord[:-1],
                                        outputs_angle[:-1], outputs_offset[:-1],
                                        outputs_size[:-1], outputs_depth[:-1])
        ]
    # TODO(synk): postprocess()/nms_3d() are host-side numpy/CPU routines with
    # data-dependent control flow; not translated to Pallas.
    return out


# ----------------------------- main -----------------------------

if __name__ == "__main__":
    B, H, W = 2, 16, 16
    num_channels = 8          # backbone.num_channels
    hidden_dim = 32           # transformer.d_model
    num_classes = 4
    num_queries = 8
    num_dec_layers = 2

    key = jax.random.PRNGKey(0)
    kp, kx = jax.random.split(key)
    params = init_detr_params(kp, num_channels, hidden_dim, num_classes,
                              num_queries, num_dec_layers)
    fused = fuse_detr_params(params, hidden_dim, num_classes)

    images = jax.random.normal(kx, (B, 3, H, W), jnp.float32)   # samples.tensor (NCHW)
    mask = jnp.zeros((B, H, W), dtype=jnp.bool_)                # samples.mask (no padding)

    out = detr_forward(fused, images, mask, hidden_dim, aux_loss=True)
    out = jax.tree_util.tree_map(jax.block_until_ready, out)

    assert out["pred_logits"].shape == (B, num_queries, num_classes + 1)
    assert out["pred_boxes"].shape == (B, num_queries, 4)
    assert out["pred_angle"].shape == (B, num_queries, 60)
    assert out["pred_offset"].shape == (B, num_queries, 2)
    assert out["pred_size"].shape == (B, num_queries, 3)
    assert out["pred_depth"].shape == (B, num_queries, 1)
    assert out["pred_obj_features"].shape == (B, num_queries, hidden_dim)
    assert len(out["aux_outputs"]) == num_dec_layers - 1
    assert bool(jnp.all(out["pred_boxes"] >= 0) & jnp.all(out["pred_boxes"] <= 1))

    print("KERNEL_OK")
</pallas_src>

<mosaic_0001>
module attributes {stable_mosaic.version = 11 : i64} {
  func.func @_stem_kernel(%arg0: i32, %arg1: memref<128x3xf32, #tpu.memory_space<vmem>>, %arg2: memref<3x32xbf16, #tpu.memory_space<vmem>>, %arg3: memref<1x32xf32, #tpu.memory_space<vmem>>, %arg4: memref<128x32xf32, #tpu.memory_space<vmem>>) attributes {dimension_semantics = [#tpu.dimension_semantics<parallel>], iteration_bounds = array<i64: 1>, scalar_prefetch = 0 : i64, scratch_operands = 0 : i64, tpu.core_type = #tpu.core_type<tc>, window_params = [{transform_indices = @transform_0, window_bounds = array<i64: 128, 3>}, {pipeline_mode = #tpu.pipeline_mode<synchronous>, transform_indices = @transform_1, window_bounds = array<i64: 3, 32>}, {pipeline_mode = #tpu.pipeline_mode<synchronous>, transform_indices = @transform_2, window_bounds = array<i64: 1, 32>}, {transform_indices = @transform_3, window_bounds = array<i64: 128, 32>}]} {
    %c0 = arith.constant 0 : index
    %c0_0 = arith.constant 0 : index
    %0 = vector.load %arg1[%c0, %c0_0] : memref<128x3xf32, #tpu.memory_space<vmem>>, vector<128x3xf32>
    %1 = arith.truncf %0 : vector<128x3xf32> to vector<128x3xbf16>
    %c0_1 = arith.constant 0 : index
    %c0_2 = arith.constant 0 : index
    %2 = vector.load %arg2[%c0_1, %c0_2] : memref<3x32xbf16, #tpu.memory_space<vmem>>, vector<3x32xbf16>
    %cst = arith.constant dense<0.000000e+00> : vector<128x32xf32>
    %3 = tpu.matmul %1, %2, %cst {dimension_numbers = #tpu.dot_dimension_numbers<[1], [0], [0], [1], [0, 0, 1, 1], [], []>} : vector<128x3xbf16>, vector<3x32xbf16>, vector<128x32xf32> -> vector<128x32xf32>
    %c0_3 = arith.constant 0 : index
    %c0_4 = arith.constant 0 : index
    %4 = vector.load %arg3[%c0_3, %c0_4] : memref<1x32xf32, #tpu.memory_space<vmem>>, vector<1x32xf32>
    %5 = vector.broadcast %4 : vector<1x32xf32> to vector<128x32xf32>
    %6 = arith.addf %3, %5 : vector<128x32xf32>
    %c0_5 = arith.constant 0 : index
    %c0_6 = arith.constant 0 : index
    %7 = vector.load %arg4[%c0_5, %c0_6] : memref<128x32xf32, #tpu.memory_space<vmem>>, vector<128x32xf32>
    tpu.vector_store %arg4[%c0_5, %c0_6], %6 {strides = array<i32>} : memref<128x32xf32, #tpu.memory_space<vmem>>, vector<128x32xf32>,
    return
  }
  func.func @transform_0(%arg0: i32) -> (i32, i32) {
    %c0_i32 = arith.constant 0 : i32
    %c0_i32_0 = arith.constant 0 : i32
    return %arg0, %c0_i32 : i32, i32
  }
  func.func @transform_1(%arg0: i32) -> (i32, i32) {
    %c0_i32 = arith.constant 0 : i32
    %c0_i32_0 = arith.constant 0 : i32
    %c0_i32_1 = arith.constant 0 : i32
    return %c0_i32, %c0_i32_0 : i32, i32
  }
  func.func @transform_2(%arg0: i32) -> (i32, i32) {
    %c0_i32 = arith.constant 0 : i32
    %c0_i32_0 = arith.constant 0 : i32
    %c0_i32_1 = arith.constant 0 : i32
    return %c0_i32, %c0_i32_0 : i32, i32
  }
  func.func @transform_3(%arg0: i32) -> (i32, i32) {
    %c0_i32 = arith.constant 0 : i32
    %c0_i32_0 = arith.constant 0 : i32
    return %arg0, %c0_i32 : i32, i32
  }
}

</mosaic_0001>

<bundles_post_ra>
// kernel: tpu_custom_call.1
= control target key start
LH: loop header
LB: loop body
LE: loop exit
PB: predicated region body
PF: predicated region fallthrough
CT: control target
= control target key end

     0   :  { %vm72_vm0 = vcmask 1040384   ;;  %vm73_vm1 = vcmask 1041408   ;;  %v236_v1 = vmov 65535   ;;  %vm47_vm2 = vcmask 23552   ;;  %s383_s1 = inlined_call_operand.vmem [shape: bf16[3,32], index: 1, kind: input, shape index: {}]   ;;  %s384_s0 = inlined_call_operand.vmem [shape: f32[128,3], index: 0, kind: input, shape index: {}]   ;;  %s385_s2 = inlined_call_operand.vmem [shape: f32[1,32], index: 2, kind: input, shape index: {}]   ;;  %s386_s3 = inlined_call_operand.vmem [shape: f32[128,32], index: 3, kind: output, shape index: {}]  }
   0x1   :  { %v39_v0 = vld [vmem:[%s383_s1] sm:$0x3]  ;;  %v74_v2 = vsel %vm72_vm0, 4294967295, %v236_v1  ;;  %v16_v4 = vld [vmem:[%s384_s0 + $0x8] sm:$0xff]  ;;  %v17_v9 = vld [vmem:[%s384_s0 + $0x10] sm:$0xff]  ;;  %vm176_vm3 = vcmask 261120  }
   0x2   :  { %v15_v3 = vld [vmem:[%s384_s0] sm:$0xff]  ;;  %v75_v5 = vsel %vm73_vm1, %v74_v2, 0  ;;  %v24_v8 = vld [vmem:[%s384_s0 + $0x48] sm:$0xff]  ;;  %v18_v12 = vld [vmem:[%s384_s0 + $0x18] sm:$0xff] }
   0x3   :  { %v31_v6 = vpack.c.bf16 %v16_v4, %v15_v3  ;;  %v23_v7 = vld [vmem:[%s384_s0 + $0x40] sm:$0xff]  ;;  %v77_v10 = vand.u32 %v75_v5, %v39_v0  ;;  %v25_v13 = vld [vmem:[%s384_s0 + $0x50] sm:$0xff]  ;;  %v26_v14 = vld [vmem:[%s384_s0 + $0x58] sm:$0xff]  ;;  %v32_v18 = vpack.c.bf16 %v18_v12, %v17_v9 }
   0x4   :  { %v35_v11 = vpack.c.bf16 %v24_v8, %v23_v7  ;;  %v19_v15 = vld [vmem:[%s384_s0 + $0x20] sm:$0xff]  ;;  %v20_v16 = vld [vmem:[%s384_s0 + $0x28] sm:$0xff]  ;;  %v36_v19 = vpack.c.bf16 %v26_v14, %v25_v13  ;;  %v21_v23 = vld [vmem:[%s384_s0 + $0x30] sm:$0xff] }
   0x5   :  { %217 = vmatprep.mubr.msk.bf16.mxu0 %vm47_vm2, %v31_v6  ;;  %v27_v17 = vld [vmem:[%s384_s0 + $0x60] sm:$0xff]  ;;  %215 = vmatprep.subr.bf16.mxu0 %v77_v10  ;;  %v28_v20 = vld [vmem:[%s384_s0 + $0x68] sm:$0xff]  ;;  %v33_v21 = vpack.c.bf16 %v20_v16, %v19_v15  ;;  %v22_v24 = vld [vmem:[%s384_s0 + $0x38] sm:$0xff] }
   0x6   :  { %233 = vmatprep.subr.bf16.mxu1 %v77_v10  ;;  %216 = vmatpush3.bf16.msra.mxu0 %v77_v10  ;;  %v37_v22 = vpack.c.bf16 %v28_v20, %v27_v17  ;;  %v29_v25 = vld [vmem:[%s384_s0 + $0x70] sm:$0xff]  ;;  %v30_v26 = vld [vmem:[%s384_s0 + $0x78] sm:$0xff]  ;;  %v34_v27 = vpack.c.bf16 %v22_v24, %v21_v23  ;;  %v197_v29 = vld [vmem:[%s385_s2] ss:$0 sm:$0xff] }
   0x7   :  { %234 = vmatpush3.bf16.msra.mxu1 %v77_v10  ;;  %225 = vmatprep.mubr.msk.bf16.mxu1 %vm47_vm2, %v35_v11  ;;  %v38_v28 = vpack.c.bf16 %v30_v26, %v29_v25 }
   0x9   :  { %218 = vmatmul.mubr.msk.bf16.vlgmr.msra.gmra.mrb[0].mxu0 %vm47_vm2, %v32_v18 }
   0xa   :  { %226 = vmatmul.mubr.msk.bf16.vlgmr.msra.gmra.mrb[0].mxu1 %vm47_vm2, %v36_v19  ;;  %221 = vmatprep.mubr.msk.bf16.mxu0 %vm47_vm2, %v33_v21 }
   0xb   :  { %229 = vmatprep.mubr.msk.bf16.mxu1 %vm47_vm2, %v37_v22 }
  0x11   :  { %222 = vmatmul.mubr.msk.bf16.gmra.mrb[4].mxu0 %vm47_vm2, %v34_v27 }
  0x12   :  { %230 = vmatmul.mubr.msk.bf16.gmra.mrb[4].mxu1 %vm47_vm2, %v38_v28 }
  0xdc   :  { %v219_v30 = vpop.f32.mrb[0].mxu0 }
  0xdd   :  { %v227_v31 = vpop.f32.mrb[0].mxu1  ;;  %v122_v32 = vadd.f32 %v219_v30, %v197_v29  ;;  %v113_v34 = vpop.f32.mrb[1].mxu0 }
  0xde   :  { %v154_v33 = vadd.f32 %v227_v31, %v197_v29  ;;  %v145_v35 = vpop.f32.mrb[1].mxu1  ;;  %v114_v36 = vadd.f32 %v197_v29, %v113_v34  ;;  %v220_v38 = vpop.f32.mrb[2].mxu0 }
  0xdf   :  { %v146_v37 = vadd.f32 %v197_v29, %v145_v35  ;;  %v228_v39 = vpop.f32.mrb[2].mxu1  ;;  %179 = vst.msk [vmem:[%s386_s3 + $0x10] sm:$0xff] %vm176_vm3, %v122_v32  ;;  %v125_v40 = vadd.f32 %v220_v38, %v197_v29  ;;  %v116_v42 = vpop.f32.mrb[3].mxu0 }
  0xe0   :  { %187 = vst.msk [vmem:[%s386_s3 + $0x50] sm:$0xff] %vm176_vm3, %v154_v33  ;;  %v157_v41 = vadd.f32 %v228_v39, %v197_v29  ;;  %v148_v43 = vpop.f32.mrb[3].mxu1  ;;  %177 = vst.msk [vmem:[%s386_s3] sm:$0xff] %vm176_vm3, %v114_v36  ;;  %v117_v44 = vadd.f32 %v197_v29, %v116_v42 }
  0xe1   :  { %185 = vst.msk [vmem:[%s386_s3 + $0x40] sm:$0xff] %vm176_vm3, %v146_v37  ;;  %v149_v45 = vadd.f32 %v197_v29, %v148_v43  ;;  %180 = vst.msk [vmem:[%s386_s3 + $0x18] sm:$0xff] %vm176_vm3, %v125_v40 }
  0xe2   :  { %188 = vst.msk [vmem:[%s386_s3 + $0x58] sm:$0xff] %vm176_vm3, %v157_v41  ;;  %178 = vst.msk [vmem:[%s386_s3 + $0x8] sm:$0xff] %vm176_vm3, %v117_v44 }
  0xe3   :  { %186 = vst.msk [vmem:[%s386_s3 + $0x48] sm:$0xff] %vm176_vm3, %v149_v45 }
  0xe4   :  { %v223_v46 = vpop.f32.mrb[4].mxu0 }
  0xe5   :  { %v231_v47 = vpop.f32.mrb[4].mxu1  ;;  %v138_v48 = vadd.f32 %v223_v46, %v197_v29  ;;  %v129_v50 = vpop.f32.mrb[5].mxu0 }
  0xe6   :  { %v170_v49 = vadd.f32 %v231_v47, %v197_v29  ;;  %v161_v51 = vpop.f32.mrb[5].mxu1  ;;  %v130_v52 = vadd.f32 %v197_v29, %v129_v50  ;;  %v224_v54 = vpop.f32.mrb[6].mxu0 }
  0xe7   :  { %v162_v53 = vadd.f32 %v197_v29, %v161_v51  ;;  %v232_v55 = vpop.f32.mrb[6].mxu1  ;;  %183 = vst.msk [vmem:[%s386_s3 + $0x30] sm:$0xff] %vm176_vm3, %v138_v48  ;;  %v141_v56 = vadd.f32 %v224_v54, %v197_v29  ;;  %v132_v58 = vpop.f32.mrb[7].mxu0 }
  0xe8   :  { %191 = vst.msk [vmem:[%s386_s3 + $0x70] sm:$0xff] %vm176_vm3, %v170_v49  ;;  %v173_v57 = vadd.f32 %v232_v55, %v197_v29  ;;  %v164_v59 = vpop.f32.mrb[7].mxu1  ;;  %181 = vst.msk [vmem:[%s386_s3 + $0x20] sm:$0xff] %vm176_vm3, %v130_v52  ;;  %v133_v60 = vadd.f32 %v197_v29, %v132_v58 }
  0xe9   :  { %189 = vst.msk [vmem:[%s386_s3 + $0x60] sm:$0xff] %vm176_vm3, %v162_v53  ;;  %v165_v61 = vadd.f32 %v197_v29, %v164_v59  ;;  %184 = vst.msk [vmem:[%s386_s3 + $0x38] sm:$0xff] %vm176_vm3, %v141_v56 }
  0xea   :  { %192 = vst.msk [vmem:[%s386_s3 + $0x78] sm:$0xff] %vm176_vm3, %v173_v57  ;;  %182 = vst.msk [vmem:[%s386_s3 + $0x28] sm:$0xff] %vm176_vm3, %v133_v60 }
  0xeb   :  { %190 = vst.msk [vmem:[%s386_s3 + $0x68] sm:$0xff] %vm176_vm3, %v165_v61 }

</bundles_post_ra>
